<compile_context>
chip_gen: v7x
topology: tpu7x:2x2x1
jax: 0.10.0
libtpu: 0.0.40
codegen_flags: <defaults>
</compile_context>

<pallas_src>
import math
import numpy as np
import jax
import jax.numpy as jnp
from jax.experimental import pallas as pl
from jax.experimental.pallas import tpu as pltpu


# ---------------------------------------------------------------------------
# Pallas kernel wrapper
# ---------------------------------------------------------------------------
def fusion_block_pallas(f1, f2, params, *, residual=None, fast=False):
    """f1, f2: [B, N, H, W] float32.

    residual: optional (r1, r2), each [B, N, H, W]; if given, the kernel also applies
    FusionLayer's tail  out_i = relu(fusion_i + r_i)  before storing.
    Returns (out1, out2), each [B, N, H, W] float32.
    """
    B, N, H, W = f1.shape
    NH = N * H
    Wk, bk, Wq, bq, W1, b1, W2, b2 = params

    inv_dk = 1.0 / math.sqrt(W)      # scores scale (d_k == d_model == W)
    inv_hw = 1.0 / float(H * W)      # adaptive-avg-pool normalizer
    mm_dtype = jnp.bfloat16 if fast else jnp.float32

    # ---- wrapper-side parameter / layout prep (plain-JAX "layout plumbing") ----
    wkq = jnp.concatenate([Wk.T, Wq.T], axis=1).astype(mm_dtype)        # [W, 2W]
    bkq = jnp.concatenate([bk, bq]).reshape(1, 2 * W).astype(jnp.float32)

    # 0/1 expansion matrix: expand[n*H + h, n] = 1 (per-channel gate -> per-row gate).
    expand = jnp.repeat(jnp.eye(N, dtype=jnp.float32), H, axis=0)       # [N*H, N]
    # Fold AdaptiveAvgPool2d into the first channel-att Linear:
    #   W1 @ avgpool(o)  ==  w1p @ rowsum(o)   with   w1p = (W1 @ expand^T) / (H*W)
    w1p = (W1 @ expand.T) * inv_hw                                      # [N//2, N*H]
    b1c = b1.reshape(N // 2, 1)                                         # [N//2, 1]
    b2c = b2.reshape(N, 1)                                              # [N, 1]

    # Inputs presented as [B*N*H, W] (pure reshapes); outputs in the same layout.
    f1r = f1.reshape(B * NH, W)
    f2r = f2.reshape(B * NH, W)

    has_res = residual is not None
    extra_inputs = ()
    if has_res:
        r1, r2 = residual
        extra_inputs = (r1.reshape(B * NH, W), r2.reshape(B * NH, W))

    def kernel(*refs):
        if has_res:
            (x1_ref, x2_ref, wkq_ref, bkq_ref, w1p_ref, b1_ref, w2_ref, b2_ref,
             e_ref, r1_ref, r2_ref, o1_ref, o2_ref) = refs
        else:
            (x1_ref, x2_ref, wkq_ref, bkq_ref, w1p_ref, b1_ref, w2_ref, b2_ref,
             e_ref, o1_ref, o2_ref) = refs

        # One batch element per grid step; both L=2 slots fused into the matmul rows.
        x1 = x1_ref[...]                               # [N*H, W]  slot-0 values (f32)
        x2 = x2_ref[...]                               # [N*H, W]  slot-1 values (f32)
        xall = jnp.concatenate([x1, x2], axis=0)       # [2*N*H, W] (small VMEM copy)

        # Fused k/q projection: a single MXU matmul + one fused bias row.
        kq = jnp.dot(xall.astype(wkq_ref.dtype), wkq_ref[...],
                     preferred_element_type=jnp.float32) + bkq_ref[...]   # [2NH, 2W]
        k1, k2 = kq[:NH, :W], kq[NH:, :W]
        qdiff = kq[:NH, W:] - kq[NH:, W:]              # q1 - q2, [NH, W]

        # 2-way softmax over the slot axis collapses to a sigmoid of the score
        # difference:  attn_i[0] = sigmoid((s_i1 - s_i2))  with
        #              s_i1 - s_i2 = k_i . (q1 - q2) / sqrt(d_k).
        a1 = jax.nn.sigmoid(jnp.sum(k1 * qdiff, axis=-1, keepdims=True) * inv_dk)
        a2 = jax.nn.sigmoid(jnp.sum(k2 * qdiff, axis=-1, keepdims=True) * inv_dk)

        xdiff = x1 - x2
        o1 = x2 + a1 * xdiff                           # [NH, W]  slot-0 attention out
        o2 = x2 + a2 * xdiff                           # [NH, W]  slot-1 attention out

        # channel_att, batched over both slots (2 columns):
        #   avg-pool folded into w1p;  Linear -> ReLU -> Linear -> Sigmoid.
        rs = jnp.concatenate([jnp.sum(o1, axis=-1, keepdims=True),
                              jnp.sum(o2, axis=-1, keepdims=True)], axis=1)   # [NH, 2]
        h = jnp.maximum(jnp.dot(w1p_ref[...], rs,
                                preferred_element_type=jnp.float32) + b1_ref[...], 0.0)
        g = jax.nn.sigmoid(jnp.dot(w2_ref[...], h,
                                   preferred_element_type=jnp.float32) + b2_ref[...])  # [N, 2]
        gr = jnp.dot(e_ref[...], g, preferred_element_type=jnp.float32)  # [NH, 2] gate/row

        # einsum('ijkl,ij->ijkl'): per-channel gate; stores stay lane-dense.
        y1 = o1 * gr[:, 0:1]
        y2 = o2 * gr[:, 1:2]
        if has_res:
            # FusionLayer tail fused in-register: relu(out + residual).
            y1 = jnp.maximum(y1 + r1_ref[...], 0.0)
            y2 = jnp.maximum(y2 + r2_ref[...], 0.0)
        o1_ref[...] = y1.astype(o1_ref.dtype)
        o2_ref[...] = y2.astype(o2_ref.dtype)

    full = lambda b: (0, 0)
    x_spec = pl.BlockSpec((NH, W), lambda b: (b, 0))

    in_specs = [
        x_spec,                                   # f1 rows
        x_spec,                                   # f2 rows
        pl.BlockSpec((W, 2 * W), full),           # [Wk^T | Wq^T]
        pl.BlockSpec((1, 2 * W), full),           # [bk | bq]
        pl.BlockSpec((N // 2, NH), full),         # W1 folded with avg-pool
        pl.BlockSpec((N // 2, 1), full),          # b1
        pl.BlockSpec((N, N // 2), full),          # W2
        pl.BlockSpec((N, 1), full),               # b2
        pl.BlockSpec((NH, N), full),              # gate expansion matrix
    ]
    if has_res:
        in_specs += [x_spec, x_spec]              # residual rows

    out1, out2 = pl.pallas_call(
        kernel,
        grid=(B,),
        in_specs=in_specs,
        out_specs=[x_spec, x_spec],
        out_shape=(jax.ShapeDtypeStruct((B * NH, W), jnp.float32),
                   jax.ShapeDtypeStruct((B * NH, W), jnp.float32)),
        compiler_params=pltpu.CompilerParams(dimension_semantics=("parallel",)),
    )(f1r, f2r, wkq, bkq, w1p, b1c, W2, b2c, expand, *extra_inputs)

    return out1.reshape(B, N, H, W), out2.reshape(B, N, H, W)


# ---------------------------------------------------------------------------
# Pure-JAX reference (mirrors the PyTorch FusionBlock.forward exactly)
# ---------------------------------------------------------------------------
def fusion_block_ref(f1, f2, params):
    Wk, bk, Wq, bq, W1, b1, W2, b2 = params
    B, N, H, W = f1.shape
    feat = jnp.stack([f1, f2], axis=2)                     # [B, N, 2, H, W]
    feat = jnp.transpose(feat, (0, 1, 3, 2, 4))            # [B, N, H, 2, W]
    key = feat @ Wk.T + bk                                 # k_linear
    query = feat @ Wq.T + bq                               # q_linear
    scores = jnp.einsum('bnhiw,bnhjw->bnhij', key, query) / math.sqrt(W)
    attn = jax.nn.softmax(scores, axis=-1)
    out = jnp.einsum('bnhij,bnhjw->bnhiw', attn, feat)     # [B, N, H, 2, W]
    out = jnp.transpose(out, (0, 3, 1, 2, 4))              # [B, 2, N, H, W]
    outf = out.reshape(B * 2, N, H, W)
    cf = outf.mean(axis=(2, 3))                            # [B*2, N]
    h = jnp.maximum(cf @ W1.T + b1, 0.0)
    cw = jax.nn.sigmoid(h @ W2.T + b2)                     # [B*2, N]
    outf = outf * cw[:, :, None, None]
    outf = outf.reshape(B, 2, N, H, W)
    return outf[:, 0], outf[:, 1]


# ---------------------------------------------------------------------------
def make_params(key, N, W):
    ks = jax.random.split(key, 8)
    s = 0.1
    Wk = jax.random.normal(ks[0], (W, W), jnp.float32) * s
    bk = jax.random.normal(ks[1], (W,), jnp.float32) * s
    Wq = jax.random.normal(ks[2], (W, W), jnp.float32) * s
    bq = jax.random.normal(ks[3], (W,), jnp.float32) * s
    W1 = jax.random.normal(ks[4], (N // 2, N), jnp.float32) * s
    b1 = jax.random.normal(ks[5], (N // 2,), jnp.float32) * s
    W2 = jax.random.normal(ks[6], (N, N // 2), jnp.float32) * s
    b2 = jax.random.normal(ks[7], (N,), jnp.float32) * s
    return (Wk, bk, Wq, bq, W1, b1, W2, b2)


def _check(B, N, H, W, *, fast, with_residual, rtol, atol):
    root = jax.random.PRNGKey(0)
    k_f1, k_f2, k_r1, k_r2, k_p = jax.random.split(root, 5)
    f1 = jax.random.normal(k_f1, (B, N, H, W), jnp.float32)
    f2 = jax.random.normal(k_f2, (B, N, H, W), jnp.float32)
    params = make_params(k_p, N, W)

    residual = None
    if with_residual:
        residual = (jax.random.normal(k_r1, (B, N, H, W), jnp.float32),
                    jax.random.normal(k_r2, (B, N, H, W), jnp.float32))

    out1, out2 = fusion_block_pallas(f1, f2, params, residual=residual, fast=fast)
    out1 = jax.block_until_ready(out1)
    out2 = jax.block_until_ready(out2)

    ref1, ref2 = fusion_block_ref(f1, f2, params)
    if with_residual:
        ref1 = jnp.maximum(ref1 + residual[0], 0.0)
        ref2 = jnp.maximum(ref2 + residual[1], 0.0)
    np.testing.assert_allclose(np.asarray(out1), np.asarray(ref1), rtol=rtol, atol=atol)
    np.testing.assert_allclose(np.asarray(out2), np.asarray(ref2), rtol=rtol, atol=atol)


if __name__ == "__main__":
    # planes = N (channels), d_model = W (last dim feeds the k/q Linear layers).
    # Primary config uses d_model = 128 so the lane axis is natively dense.
    _check(2, 4, 8, 128, fast=False, with_residual=False, rtol=1e-4, atol=1e-4)
    _check(2, 4, 8, 128, fast=False, with_residual=True,  rtol=1e-4, atol=1e-4)
    _check(2, 4, 8, 128, fast=True,  with_residual=False, rtol=5e-2, atol=5e-2)
    _check(2, 4, 8, 32,  fast=False, with_residual=False, rtol=1e-4, atol=1e-4)
    print("KERNEL_OK")
</pallas_src>

<mosaic_0001>
module attributes {stable_mosaic.version = 11 : i64} {
  func.func @kernel(%arg0: i32, %arg1: memref<32x128xf32, #tpu.memory_space<vmem>>, %arg2: memref<32x128xf32, #tpu.memory_space<vmem>>, %arg3: memref<128x256xf32, #tpu.memory_space<vmem>>, %arg4: memref<1x256xf32, #tpu.memory_space<vmem>>, %arg5: memref<2x32xf32, #tpu.memory_space<vmem>>, %arg6: memref<2x1xf32, #tpu.memory_space<vmem>>, %arg7: memref<4x2xf32, #tpu.memory_space<vmem>>, %arg8: memref<4x1xf32, #tpu.memory_space<vmem>>, %arg9: memref<32x4xf32, #tpu.memory_space<vmem>>, %arg10: memref<32x128xf32, #tpu.memory_space<vmem>>, %arg11: memref<32x128xf32, #tpu.memory_space<vmem>>) attributes {dimension_semantics = [#tpu.dimension_semantics<parallel>], iteration_bounds = array<i64: 2>, scalar_prefetch = 0 : i64, scratch_operands = 0 : i64, tpu.core_type = #tpu.core_type<tc>, window_params = [{transform_indices = @transform_0, window_bounds = array<i64: 32, 128>}, {transform_indices = @transform_1, window_bounds = array<i64: 32, 128>}, {pipeline_mode = #tpu.pipeline_mode<synchronous>, transform_indices = @transform_2, window_bounds = array<i64: 128, 256>}, {pipeline_mode = #tpu.pipeline_mode<synchronous>, transform_indices = @transform_3, window_bounds = array<i64: 1, 256>}, {pipeline_mode = #tpu.pipeline_mode<synchronous>, transform_indices = @transform_4, window_bounds = array<i64: 2, 32>}, {pipeline_mode = #tpu.pipeline_mode<synchronous>, transform_indices = @transform_5, window_bounds = array<i64: 2, 1>}, {pipeline_mode = #tpu.pipeline_mode<synchronous>, transform_indices = @transform_6, window_bounds = array<i64: 4, 2>}, {pipeline_mode = #tpu.pipeline_mode<synchronous>, transform_indices = @transform_7, window_bounds = array<i64: 4, 1>}, {pipeline_mode = #tpu.pipeline_mode<synchronous>, transform_indices = @transform_8, window_bounds = array<i64: 32, 4>}, {transform_indices = @transform_9, window_bounds = array<i64: 32, 128>}, {transform_indices = @transform_10, window_bounds = array<i64: 32, 128>}]} {
    %c0 = arith.constant 0 : index
    %c0_0 = arith.constant 0 : index
    %0 = vector.load %arg1[%c0, %c0_0] : memref<32x128xf32, #tpu.memory_space<vmem>>, vector<32x128xf32>
    %c0_1 = arith.constant 0 : index
    %c0_2 = arith.constant 0 : index
    %1 = vector.load %arg2[%c0_1, %c0_2] : memref<32x128xf32, #tpu.memory_space<vmem>>, vector<32x128xf32>
    %2 = tpu.concatenate %0, %1 in 0 : vector<32x128xf32>, vector<32x128xf32> -> vector<64x128xf32>
    %c0_3 = arith.constant 0 : index
    %c0_4 = arith.constant 0 : index
    %3 = vector.load %arg3[%c0_3, %c0_4] : memref<128x256xf32, #tpu.memory_space<vmem>>, vector<128x256xf32>
    %cst = arith.constant dense<0.000000e+00> : vector<64x256xf32>
    %4 = tpu.matmul %2, %3, %cst {dimension_numbers = #tpu.dot_dimension_numbers<[1], [0], [0], [1], [0, 0, 1, 1], [], []>} : vector<64x128xf32>, vector<128x256xf32>, vector<64x256xf32> -> vector<64x256xf32>
    %c0_5 = arith.constant 0 : index
    %c0_6 = arith.constant 0 : index
    %5 = vector.load %arg4[%c0_5, %c0_6] : memref<1x256xf32, #tpu.memory_space<vmem>>, vector<1x256xf32>
    %6 = vector.broadcast %5 : vector<1x256xf32> to vector<64x256xf32>
    %7 = arith.addf %4, %6 : vector<64x256xf32>
    %8 = vector.extract_strided_slice %7 {offsets = [0, 0], sizes = [32, 128], strides = [1, 1]} : vector<64x256xf32> to vector<32x128xf32>
    %9 = vector.extract_strided_slice %7 {offsets = [32, 0], sizes = [32, 128], strides = [1, 1]} : vector<64x256xf32> to vector<32x128xf32>
    %10 = vector.extract_strided_slice %7 {offsets = [0, 128], sizes = [32, 128], strides = [1, 1]} : vector<64x256xf32> to vector<32x128xf32>
    %11 = vector.extract_strided_slice %7 {offsets = [32, 128], sizes = [32, 128], strides = [1, 1]} : vector<64x256xf32> to vector<32x128xf32>
    %12 = arith.subf %10, %11 : vector<32x128xf32>
    %13 = arith.mulf %8, %12 : vector<32x128xf32>
    %cst_7 = arith.constant dense<0.000000e+00> : vector<32xf32>
    %14 = vector.multi_reduction <add>, %13, %cst_7 [1] : vector<32x128xf32> to vector<32xf32>
    %15 = vector.shape_cast %14 : vector<32xf32> to vector<32x1xf32>
    %cst_8 = arith.constant 0.0883883461 : f32
    %16 = vector.broadcast %cst_8 : f32 to vector<32x1xf32>
    %17 = arith.mulf %15, %16 : vector<32x1xf32>
    %18 = arith.negf %17 : vector<32x1xf32>
    %19 = math.exp %18 : vector<32x1xf32>
    %cst_9 = arith.constant 1.000000e+00 : f32
    %20 = vector.broadcast %cst_9 : f32 to vector<32x1xf32>
    %21 = arith.addf %20, %19 : vector<32x1xf32>
    %22 = arith.divf %20, %21 : vector<32x1xf32>
    %23 = arith.mulf %9, %12 : vector<32x128xf32>
    %cst_10 = arith.constant dense<0.000000e+00> : vector<32xf32>
    %24 = vector.multi_reduction <add>, %23, %cst_10 [1] : vector<32x128xf32> to vector<32xf32>
    %25 = vector.shape_cast %24 : vector<32xf32> to vector<32x1xf32>
    %cst_11 = arith.constant 0.0883883461 : f32
    %26 = vector.broadcast %cst_11 : f32 to vector<32x1xf32>
    %27 = arith.mulf %25, %26 : vector<32x1xf32>
    %28 = arith.negf %27 : vector<32x1xf32>
    %29 = math.exp %28 : vector<32x1xf32>
    %cst_12 = arith.constant 1.000000e+00 : f32
    %30 = vector.broadcast %cst_12 : f32 to vector<32x1xf32>
    %31 = arith.addf %30, %29 : vector<32x1xf32>
    %32 = arith.divf %30, %31 : vector<32x1xf32>
    %33 = arith.subf %0, %1 : vector<32x128xf32>
    %34 = vector.broadcast %22 : vector<32x1xf32> to vector<32x128xf32>
    %35 = arith.mulf %34, %33 : vector<32x128xf32>
    %36 = arith.addf %1, %35 : vector<32x128xf32>
    %37 = vector.broadcast %32 : vector<32x1xf32> to vector<32x128xf32>
    %38 = arith.mulf %37, %33 : vector<32x128xf32>
    %39 = arith.addf %1, %38 : vector<32x128xf32>
    %cst_13 = arith.constant dense<0.000000e+00> : vector<32xf32>
    %40 = vector.multi_reduction <add>, %36, %cst_13 [1] : vector<32x128xf32> to vector<32xf32>
    %41 = vector.shape_cast %40 : vector<32xf32> to vector<32x1xf32>
    %cst_14 = arith.constant dense<0.000000e+00> : vector<32xf32>
    %42 = vector.multi_reduction <add>, %39, %cst_14 [1] : vector<32x128xf32> to vector<32xf32>
    %43 = vector.shape_cast %42 : vector<32xf32> to vector<32x1xf32>
    %44 = tpu.concatenate %41, %43 in 1 : vector<32x1xf32>, vector<32x1xf32> -> vector<32x2xf32>
    %c0_15 = arith.constant 0 : index
    %c0_16 = arith.constant 0 : index
    %45 = vector.load %arg5[%c0_15, %c0_16] : memref<2x32xf32, #tpu.memory_space<vmem>>, vector<2x32xf32>
    %cst_17 = arith.constant dense<0.000000e+00> : vector<2x2xf32>
    %46 = tpu.matmul %45, %44, %cst_17 {dimension_numbers = #tpu.dot_dimension_numbers<[1], [0], [0], [1], [0, 0, 1, 1], [], []>} : vector<2x32xf32>, vector<32x2xf32>, vector<2x2xf32> -> vector<2x2xf32>
    %c0_18 = arith.constant 0 : index
    %c0_19 = arith.constant 0 : index
    %47 = vector.load %arg6[%c0_18, %c0_19] : memref<2x1xf32, #tpu.memory_space<vmem>>, vector<2x1xf32>
    %48 = vector.broadcast %47 : vector<2x1xf32> to vector<2x2xf32>
    %49 = arith.addf %46, %48 : vector<2x2xf32>
    %cst_20 = arith.constant 0.000000e+00 : f32
    %50 = vector.broadcast %cst_20 : f32 to vector<2x2xf32>
    %51 = arith.maximumf %49, %50 : vector<2x2xf32>
    %c0_21 = arith.constant 0 : index
    %c0_22 = arith.constant 0 : index
    %52 = vector.load %arg7[%c0_21, %c0_22] : memref<4x2xf32, #tpu.memory_space<vmem>>, vector<4x2xf32>
    %cst_23 = arith.constant dense<0.000000e+00> : vector<4x2xf32>
    %53 = tpu.matmul %52, %51, %cst_23 {dimension_numbers = #tpu.dot_dimension_numbers<[1], [0], [0], [1], [0, 0, 1, 1], [], []>} : vector<4x2xf32>, vector<2x2xf32>, vector<4x2xf32> -> vector<4x2xf32>
    %c0_24 = arith.constant 0 : index
    %c0_25 = arith.constant 0 : index
    %54 = vector.load %arg8[%c0_24, %c0_25] : memref<4x1xf32, #tpu.memory_space<vmem>>, vector<4x1xf32>
    %55 = vector.broadcast %54 : vector<4x1xf32> to vector<4x2xf32>
    %56 = arith.addf %53, %55 : vector<4x2xf32>
    %57 = arith.negf %56 : vector<4x2xf32>
    %58 = math.exp %57 : vector<4x2xf32>
    %cst_26 = arith.constant 1.000000e+00 : f32
    %59 = vector.broadcast %cst_26 : f32 to vector<4x2xf32>
    %60 = arith.addf %59, %58 : vector<4x2xf32>
    %61 = arith.divf %59, %60 : vector<4x2xf32>
    %c0_27 = arith.constant 0 : index
    %c0_28 = arith.constant 0 : index
    %62 = vector.load %arg9[%c0_27, %c0_28] : memref<32x4xf32, #tpu.memory_space<vmem>>, vector<32x4xf32>
    %cst_29 = arith.constant dense<0.000000e+00> : vector<32x2xf32>
    %63 = tpu.matmul %62, %61, %cst_29 {dimension_numbers = #tpu.dot_dimension_numbers<[1], [0], [0], [1], [0, 0, 1, 1], [], []>} : vector<32x4xf32>, vector<4x2xf32>, vector<32x2xf32> -> vector<32x2xf32>
    %64 = vector.extract_strided_slice %63 {offsets = [0, 0], sizes = [32, 1], strides = [1, 1]} : vector<32x2xf32> to vector<32x1xf32>
    %65 = vector.broadcast %64 : vector<32x1xf32> to vector<32x128xf32>
    %66 = arith.mulf %36, %65 : vector<32x128xf32>
    %67 = vector.extract_strided_slice %63 {offsets = [0, 1], sizes = [32, 1], strides = [1, 1]} : vector<32x2xf32> to vector<32x1xf32>
    %68 = vector.broadcast %67 : vector<32x1xf32> to vector<32x128xf32>
    %69 = arith.mulf %39, %68 : vector<32x128xf32>
    %c0_30 = arith.constant 0 : index
    %c0_31 = arith.constant 0 : index
    %70 = vector.load %arg10[%c0_30, %c0_31] : memref<32x128xf32, #tpu.memory_space<vmem>>, vector<32x128xf32>
    tpu.vector_store %arg10[%c0_30, %c0_31], %66 {strides = array<i32>} : memref<32x128xf32, #tpu.memory_space<vmem>>, vector<32x128xf32>,
    %c0_32 = arith.constant 0 : index
    %c0_33 = arith.constant 0 : index
    %71 = vector.load %arg11[%c0_32, %c0_33] : memref<32x128xf32, #tpu.memory_space<vmem>>, vector<32x128xf32>
    tpu.vector_store %arg11[%c0_32, %c0_33], %69 {strides = array<i32>} : memref<32x128xf32, #tpu.memory_space<vmem>>, vector<32x128xf32>,
    return
  }
  func.func @transform_0(%arg0: i32) -> (i32, i32) {
    %c0_i32 = arith.constant 0 : i32
    %c0_i32_0 = arith.constant 0 : i32
    return %arg0, %c0_i32 : i32, i32
  }
  func.func @transform_1(%arg0: i32) -> (i32, i32) {
    %c0_i32 = arith.constant 0 : i32
    %c0_i32_0 = arith.constant 0 : i32
    return %arg0, %c0_i32 : i32, i32
  }
  func.func @transform_2(%arg0: i32) -> (i32, i32) {
    %c0_i32 = arith.constant 0 : i32
    %c0_i32_0 = arith.constant 0 : i32
    %c0_i32_1 = arith.constant 0 : i32
    return %c0_i32, %c0_i32_0 : i32, i32
  }
  func.func @transform_3(%arg0: i32) -> (i32, i32) {
    %c0_i32 = arith.constant 0 : i32
    %c0_i32_0 = arith.constant 0 : i32
    %c0_i32_1 = arith.constant 0 : i32
    return %c0_i32, %c0_i32_0 : i32, i32
  }
  func.func @transform_4(%arg0: i32) -> (i32, i32) {
    %c0_i32 = arith.constant 0 : i32
    %c0_i32_0 = arith.constant 0 : i32
    %c0_i32_1 = arith.constant 0 : i32
    return %c0_i32, %c0_i32_0 : i32, i32
  }
  func.func @transform_5(%arg0: i32) -> (i32, i32) {
    %c0_i32 = arith.constant 0 : i32
    %c0_i32_0 = arith.constant 0 : i32
    %c0_i32_1 = arith.constant 0 : i32
    return %c0_i32, %c0_i32_0 : i32, i32
  }
  func.func @transform_6(%arg0: i32) -> (i32, i32) {
    %c0_i32 = arith.constant 0 : i32
    %c0_i32_0 = arith.constant 0 : i32
    %c0_i32_1 = arith.constant 0 : i32
    return %c0_i32, %c0_i32_0 : i32, i32
  }
  func.func @transform_7(%arg0: i32) -> (i32, i32) {
    %c0_i32 = arith.constant 0 : i32
    %c0_i32_0 = arith.constant 0 : i32
    %c0_i32_1 = arith.constant 0 : i32
    return %c0_i32, %c0_i32_0 : i32, i32
  }
  func.func @transform_8(%arg0: i32) -> (i32, i32) {
    %c0_i32 = arith.constant 0 : i32
    %c0_i32_0 = arith.constant 0 : i32
    %c0_i32_1 = arith.constant 0 : i32
    return %c0_i32, %c0_i32_0 : i32, i32
  }
  func.func @transform_9(%arg0: i32) -> (i32, i32) {
    %c0_i32 = arith.constant 0 : i32
    %c0_i32_0 = arith.constant 0 : i32
    return %arg0, %c0_i32 : i32, i32
  }
  func.func @transform_10(%arg0: i32) -> (i32, i32) {
    %c0_i32 = arith.constant 0 : i32
    %c0_i32_0 = arith.constant 0 : i32
    return %arg0, %c0_i32 : i32, i32
  }
}

</mosaic_0001>

<bundles_post_ra>
// kernel: tpu_custom_call.1
= control target key start
LH: loop header
LB: loop body
LE: loop exit
PB: predicated region body
PF: predicated region fallthrough
CT: control target
= control target key end

     0   :  { %s2206_s0 = inlined_call_operand.hbm [shape: f32[64,128], index: 0, kind: input, shape index: {}]   ;;  %s2207_s1 = inlined_call_operand.hbm [shape: f32[64,128], index: 1, kind: input, shape index: {}]   ;;  %s2208_s2 = inlined_call_operand.hbm [shape: f32[128,256], index: 2, kind: input, shape index: {}]   ;;  %s2209_s3 = inlined_call_operand.vmem [shape: f32[1,256], index: 3, kind: input, shape index: {}]   ;;  %s2210_s4 = inlined_call_operand.vmem [shape: f32[2,32], index: 4, kind: input, shape index: {}]   ;;  %s2211_s5 = inlined_call_operand.vmem [shape: f32[2,1], index: 5, kind: input, shape index: {}]   ;;  %s2212_s6 = inlined_call_operand.vmem [shape: f32[4,2], index: 6, kind: input, shape index: {}]   ;;  %s2213_s7 = inlined_call_operand.vmem [shape: f32[4,1], index: 7, kind: input, shape index: {}]   ;;  %s2214_s8 = inlined_call_operand.vmem [shape: f32[32,4], index: 8, kind: input, shape index: {}]   ;;  %s2215_s9 = inlined_call_operand.hbm [shape: f32[64,128], index: 9, kind: output, shape index: {0}]   ;;  %s2216_s10 = inlined_call_operand.hbm [shape: f32[64,128], index: 10, kind: output, shape index: {1}]  }
   0x1   :  { %2226 = sst [smem:[#allocation21_spill]] %s2206_s0 }
   0x2   :  { %2227 = sst [smem:[#allocation22_spill]] %s2208_s2 }
   0x3   :  { %16 = vsyncpa [#allocation3], 0 }
   0x4   :  { %18 = vsyncpa [#allocation3 + $0x1], 0 }
   0x5   :  { %19 = vsyncpa [#allocation6], 0 }
   0x6   :  { %21 = vsyncpa [#allocation6 + $0x1], 0 }
   0x7   :  { %22 = vsyncpa [#allocation4], 0 }
   0x8   :  { %24 = vsyncpa [#allocation4 + $0x1], 0 }
   0x9   :  { %25 = vsyncpa [#allocation10], 0 }
   0xa   :  { %27 = vsyncpa [#allocation10 + $0x1], 0  ;;  %s1764_s13 = smov 0   ;;  %s1766_s14 = smov 0  }
   0xb   :  { %s1768_s15 = smov 0   ;;  %s1770_s16 = smov 0  }
   0xc LB: > { %2228 = sst [smem:[#allocation16_spill]] %s1679_s13  ;;  %s1785_s17 = sadd.s32 4294967295, %s1691_s16   ;;  %s1691_s16 = sphi %s1770_s16, %s2251_s16   ;;  %s1687_s15 = sphi %s1768_s15, %s2253_s15   ;;  %s1683_s14 = sphi %s1766_s14, %s2255_s14   ;;  %s1679_s13 = sphi %s1764_s13, %s2254_s13  }
   0xd   : > { %2229 = sst [smem:[#allocation17_spill]] %s1687_s15  ;;  %s1240_s18 = sadd.s32 4294967294, %s1691_s16  }
   0xe   : > { %p53_p0 = scmp.ne.s32.totalorder %s1683_s14, %s1679_s13  ;;  %p2219_p1 = scmp.eq.s32.totalorder %s1785_s17, 0 }
   0xf   : > { %p256_p3 = scmp.eq.s32.totalorder %s1240_s18, 1  ;;  %p1241_p5 = scmp.ge.s32.totalorder %s1691_s16, 1 }
  0x10   : > { %p1794_p4 = por %p2219_p1, %p53_p0  ;;  %p289_p7 = scmp.lt.s32.totalorder %s1691_s16, 3 }
  0x11   : > { %p1799_p6 = por %p256_p3, %p53_p0  ;;  %s1693_s22 = smov [#allocation7]  }
  0x12   : > { %s2230_s19 = scalar_select %p1794_p4, 1, 0 }
  0x13   : > { %s2231_s20 = scalar_select %p1799_p6, 1, 0 }
  0x14   : > { %p1804_p8 = pnand %p1241_p5, %p289_p7  ;;  %s301_s23 = sshll.u32 %s1693_s22, 4  ;;  %s1808_s23 = int_to_ptr.vmem [resolvable:$true] %s301_s23 }
  0x15   : > { %2232 = sst [smem:[#allocation18_spill]] %s2231_s20  ;;  %s1820_s25 = sadd.s32 1, %s1691_s16  }
  0x16   : > { %s2233_s21 = scalar_select %p1804_p8, 1, 0 }
  0x17   : > { %p1387_p9 = pneg %p1804_p8  ;;  %2235 = sst [smem:[#allocation19_spill]] %s1820_s25 }
  0x18   : > { %s40_s26 = sadd.s32 1, %s1687_s15  ;;  %s37_s27 = ssub.s32 %s1691_s16, %s1820_s25 }
  0x19   : > { %p1815_p11 = pnand %p1387_p9, %p2219_p1  ;;  %s2236_s2 = sld [smem:[#allocation22_spill]] }
  0x1b   : > { %p1499_p13 = pneg %p1815_p11 }
  0x1f   : > { %s1497_s30 = scalar_lea.hbm %s2236_s2, 4096 }
  0x20   : > { %p1498_p12 = scmp.ne.s32.totalorder %s2236_s2, %s1497_s30  ;;  %p1504_p5 = scmp.lt.u32.totalorder %s1497_s30, %s2236_s2 }
  0x22   : > { %p1500_p0 = pnand %p1499_p13, %p1498_p12 }
  0x24   : > { %p1501_p3 = pneg %p1500_p0 }
  0x26   : > { %p1506_p7 = pnand %p1504_p5, %p1501_p3 }
  0x28   : > { %1509 = shalt.err (!%p1506_p7)
}
  0x29   : > { %s1510_s25 = scalar_lea.vmem %s1808_s23, 4096  ;;  %p1518_p2 = scmp.lt.s32.totalorder %s1808_s23, %s1808_s23 }
  0x2a   : > { %p1511_p9 = scmp.ne.s32.totalorder %s1808_s23, %s1510_s25  ;;  %p1519_p6 = scmp.lt.s32.totalorder %s1510_s25, %s1510_s25 }
  0x2c   : > { %p1513_p10 = pnand %p1511_p9, %p1499_p13  ;;  %p1520_p4 = por %p1519_p6, %p1518_p2 }
  0x2e   : > { %p1514_p1 = pneg %p1513_p10 }
  0x30   : > { %p1521_p8 = pnand %p1520_p4, %p1514_p1 }
  0x32   : > { %1524 = shalt.err (!%p1521_p8)
}
  0x33   : > { %s1694_s28 = smov 256   ;;  %s1695_s29 = smov 16  }
  0x34   : > { %1390 = dma.hbm_to_vmem [thread:$0]  (!%p1815_p11), %s2236_s2, 4096, %s1808_s23, [#allocation6], %s1694_s28, %s1694_s28, %s1695_s29  }
  0x35   : > { %p38_p1 = scmp.eq.s32.totalorder %s37_s27, 0  ;;  %p47_p2 = scmp.ne.s32.totalorder %s1687_s15, %s1683_s14 }
  0x36   : > { %p48_p4 = scmp.eq.s32.totalorder %s1691_s16, 0  ;;  %p1406_p6 = scmp.lt.s32.totalorder %s1691_s16, 2 }
  0x37   : > { %s1851_s25 = scalar_select %p38_p1, %s1687_s15, %s40_s26  }
  0x38   : > { %p49_p8 = por %p48_p4, %p47_p2  ;;  %p2238_p10 = scmp.eq.s32.totalorder %s1785_s17, 1 }
  0x39   : > { %2237 = sst [smem:[#allocation20_spill]] %s1851_s25  ;;  %s333_s18 = sand.u32 1, %s1687_s15  }
  0x3a   : > { %p1855_p12 = por %p2238_p10, %p47_p2  ;;  %s2223_s22 = sshll.u32 %s1691_s16, 9 }
  0x3b   : > { %s1861_s20 = sshll.u32 %s333_s18, 5  ;;  %s2240_s0 = sld [smem:[#allocation21_spill]] }
  0x3c   : > { %s337_s26 = scalar_lea.vmem [#allocation2], %s1861_s20  ;;  %p1871_p11 = pnand %p1406_p6, %p49_p8 }
  0x3d   : > { %s344_s27 = sshll.u32 %s337_s26, 4  ;;  %s1877_s29 = scalar_lea.sflag [#allocation3], %s333_s18  ;;  %s1875_s27 = int_to_ptr.vmem [resolvable:$true] %s344_s27 }
  0x3e   : > { %p1527_p0 = pneg %p1871_p11 }
  0x41   : > { %s1868_s23 = scalar_lea.hbm %s2240_s0, %s2223_s22  ;;  %s1530_s26 = scalar_lea.hbm %s2240_s0, 1024 }
  0x42   : > { %s1525_s11 = scalar_lea.hbm %s1868_s23, 512  ;;  %p1531_p7 = scmp.lt.u32.totalorder %s1868_s23, %s2240_s0 }
  0x43   : > { %p1526_p13 = scmp.ne.s32.totalorder %s1868_s23, %s1525_s11  ;;  %p1532_p9 = scmp.lt.u32.totalorder %s1530_s26, %s1525_s11 }
  0x44   : > { %p1534_p2 = scmp.lt.u32.totalorder %s1525_s11, %s1868_s23 }
  0x45   : > { %p1528_p3 = pnand %p1527_p0, %p1526_p13  ;;  %p1533_p1 = por %p1532_p9, %p1531_p7 }
  0x47   : > { %p1529_p5 = pneg %p1528_p3  ;;  %p1535_p4 = por %p1534_p2, %p1533_p1 }
  0x49   : > { %p1536_p6 = pnand %p1535_p4, %p1529_p5 }
  0x4b   : > { %1539 = shalt.err (!%p1536_p6)
}
  0x4c   : > { %s1540_s18 = scalar_lea.vmem %s1875_s27, 512  ;;  %s1696_s24 = smov [#allocation2]  }
  0x4d   : > { %p1541_p8 = scmp.ne.s32.totalorder %s1875_s27, %s1540_s18  ;;  %s1545_s30 = sshll.u32 %s1696_s24, 4  ;;  %s1546_s30 = int_to_ptr.vmem [resolvable:$false] %s1545_s30 }
  0x4e   : > { %s1547_s2 = scalar_lea.vmem %s1546_s30, 1024  ;;  %p1548_p3 = scmp.lt.s32.totalorder %s1875_s27, %s1546_s30 }
  0x4f   : > { %p1543_p10 = pnand %p1541_p8, %p1527_p0  ;;  %p1549_p7 = scmp.lt.s32.totalorder %s1547_s2, %s1540_s18 }
  0x51   : > { %p1544_p13 = pneg %p1543_p10  ;;  %p1550_p9 = por %p1549_p7, %p1548_p3 }
  0x53   : > { %p1551_p1 = pnand %p1550_p9, %p1544_p13 }
  0x55   : > { %1554 = shalt.err (!%p1551_p1)
}
  0x56   : > { %s1697_s22 = smov 128   ;;  %s1698_s11 = smov 8  }
  0x57   : > { %1394 = dma.hbm_to_vmem [thread:$0]  (!%p1871_p11), %s1868_s23, 512, %s1875_s27, %s1877_s29, %s1697_s22, %s1697_s22, %s1698_s11  }
  0x58   : > { %s2242_s26 = sshll.u32 %s1691_s16, 9  ;;  %s358_s2 = scalar_lea.vmem [#allocation5], %s1861_s20 }
  0x59   : > { %s1913_s30 = scalar_lea.hbm %s2207_s1, %s2242_s26  ;;  %s365_s0 = sshll.u32 %s358_s2, 4  ;;  %s1917_s0 = int_to_ptr.vmem [resolvable:$true] %s365_s0 }
  0x5a   : > { %s354_s25 = sand.u32 1, %s1691_s16   ;;  %s1555_s13 = scalar_lea.hbm %s1913_s30, 512 }
  0x5b   : > { %s1919_s15 = scalar_lea.sflag [#allocation6], %s354_s25  ;;  %p1556_p5 = scmp.ne.s32.totalorder %s1913_s30, %s1555_s13 }
  0x5c   : > { %s1560_s29 = scalar_lea.hbm %s2207_s1, 1024  ;;  %p1561_p6 = scmp.lt.u32.totalorder %s1913_s30, %s2207_s1 }
  0x5d   : > { %p1558_p2 = pnand %p1556_p5, %p1527_p0  ;;  %p1562_p8 = scmp.lt.u32.totalorder %s1560_s29, %s1555_s13 }
  0x5e   : > { %p1564_p13 = scmp.lt.u32.totalorder %s1555_s13, %s1913_s30 }
  0x5f   : > { %p1559_p4 = pneg %p1558_p2  ;;  %p1563_p10 = por %p1562_p8, %p1561_p6 }
  0x61   : > { %p1565_p3 = por %p1564_p13, %p1563_p10 }
  0x63   : > { %p1566_p7 = pnand %p1565_p3, %p1559_p4 }
  0x65   : > { %1569 = shalt.err (!%p1566_p7)
}
  0x66   : > { %s1570_s20 = scalar_lea.vmem %s1917_s0, 512  ;;  %s1699_s25 = smov [#allocation5]  }
  0x67   : > { %p1571_p9 = scmp.ne.s32.totalorder %s1917_s0, %s1570_s20  ;;  %s1575_s24 = sshll.u32 %s1699_s25, 4  ;;  %s1576_s24 = int_to_ptr.vmem [resolvable:$false] %s1575_s24 }
  0x68   : > { %s1577_s2 = scalar_lea.vmem %s1576_s24, 1024  ;;  %p1578_p2 = scmp.lt.s32.totalorder %s1917_s0, %s1576_s24 }
  0x69   : > { %p1573_p1 = pnand %p1571_p9, %p1527_p0  ;;  %p1579_p6 = scmp.lt.s32.totalorder %s1577_s2, %s1570_s20 }
  0x6b   : > { %p1574_p5 = pneg %p1573_p1  ;;  %p1580_p8 = por %p1579_p6, %p1578_p2 }
  0x6d   : > { %p1581_p10 = pnand %p1580_p8, %p1574_p5 }
  0x6f   : > { %1584 = shalt.err (!%p1581_p10)
}
  0x70   : > { %1397 = dma.hbm_to_vmem [thread:$0]  (!%p1871_p11), %s1913_s30, 512, %s1917_s0, %s1919_s15, %s1697_s22, %s1697_s22, %s1698_s11  }
  0x71   : > { %p2243_p0 = scmp.ne.s32.totalorder %s2233_s21, 0 }
  0x72   : > { %s1951_s13 = sand.u32 (!%p2243_p0), 1, %s1683_s14   ;;  %p2244_p4 = scmp.ne.s32.totalorder (!%p2243_p0), %s2230_s19, 0 }
  0x73   : > { %377 = sbr.rel (%p2243_p0) target bundleno = 1598 (0x63e), region = 56  ;;  %s1954_s23 = sshll.u32 (!%p2243_p0), %s1951_s13, 5 }
  0x74   : > { %s380_s28 = scalar_lea.sflag (!%p2243_p0), [#allocation3], %s1951_s13  ;;  %s1958_s27 = scalar_lea.vmem (!%p2243_p0), [#allocation2], %s1954_s23 }
  0x7a   : > { %1658 = dma.done.wait (%p2244_p4), %s380_s28, 512  }
  0x7b   : > { %1660 = vsyncadd (%p2244_p4), %s380_s28, 4294966784  ;;  %s388_s0 = sand.u32 1, %s1785_s17   ;;  %s1966_s21 = scalar_lea.vmem [#allocation5], %s1954_s23 }
  0x7c   : > { %s389_s15 = scalar_lea.sflag [#allocation6], %s388_s0 }
  0x7d   : > { %1662 = dma.done.wait (%p2244_p4), %s389_s15, 512  }
  0x7e   : > { %1664 = vsyncadd (%p2244_p4), %s389_s15, 4294966784  ;;  %p2245_p11 = scmp.eq.s32.totalorder %s1785_s17, 0 }
  0x80   : > { %1666 = dma.done.wait (%p2245_p11), [#allocation6], 4096   ;;  %p2246_p13 = pmov %p2245_p11 }
  0x81   : > { %v1700_v0 = vmov 0.0   ;;  %v456_v1 = vld [vmem:[#allocation7 + $0x8] sm:$0xff]  ;;  %v458_v2 = vld [vmem:[#allocation7 + $0x18] sm:$0xff]  ;;  %v455_v3 = vld [vmem:[#allocation7] sm:$0xff]  ;;  %v489_v57 = vlaneseq  ;;  %vm1702_vm0 = vmmov 0   ;;  %vm732_vm1 = vcmask 7168  }
  0x82   : > { %1668 = vsyncadd (%p2246_p13), [#allocation6], 4294963200  ;;  %563 = vmatprep.mubr.f32.mxu0 %v1700_v0  ;;  %599 = vmatprep.mubr.f32.mxu1 %v1700_v0  ;;  %v1321_v4 = vpack.c.bf16 %v458_v2, %v456_v1  ;;  %v457_v5 = vld [vmem:[#allocation7 + $0x10] sm:$0xff]  ;;  %v460_v6 = vld [vmem:[#allocation7 + $0x28] sm:$0xff]  ;;  %vm744_vm2 = vcmask 261120   ;;  %vm830_vm3 = vcmask 1041408  }
  0x83   : > { %v462_v7 = vld [vmem:[#allocation7 + $0x38] sm:$0xff]  ;;  %v1323_v8 = vpack.c.bf16 %v457_v5, %v455_v3  ;;  %v459_v10 = vld [vmem:[#allocation7 + $0x20] sm:$0xff]  ;;  %v461_v11 = vld [vmem:[#allocation7 + $0x30] sm:$0xff]  ;;  %v490_v58 = vshrl.u32 %v489_v57, 7  ;;  %vm826_vm4 = vcmask 15360   ;;  %vm914_vm5 = vcmask 31744  }
  0x84   : > { %v1325_v9 = vpack.c.bf16 %v462_v7, %v460_v6  ;;  %v464_v12 = vld [vmem:[#allocation7 + $0x48] sm:$0xff]  ;;  %1322 = vmatprep.subr.bf16.mxu0 %v1321_v4  ;;  %1359 = vmatprep.subr.bf16.mxu1 %v1321_v4  ;;  %v466_v13 = vld [vmem:[#allocation7 + $0x58] sm:$0xff]  ;;  %v1327_v14 = vpack.c.bf16 %v461_v11, %v459_v10  ;;  %v463_v16 = vld [vmem:[#allocation7 + $0x40] sm:$0xff]  ;;  %vm927_vm6 = vcmask 1043456   ;;  %s435_s11 = scalar_lea.vmem [#allocation8], %s1954_s23  ;;  %s2101_s30 = scalar_lea.vmem [#allocation9], %s1954_s23 }
  0x85   : > { %1324 = vmatpush1.bf16.msra.mxu0 %v1323_v8  ;;  %1367 = vmatpush1.bf16.msra.mxu1 %v1323_v8  ;;  %v1329_v15 = vpack.c.bf16 %v466_v13, %v464_v12  ;;  %v465_v17 = vld [vmem:[#allocation7 + $0x50] sm:$0xff]  ;;  %v468_v18 = vld [vmem:[#allocation7 + $0x68] sm:$0xff]  ;;  %v470_v19 = vld [vmem:[#allocation7 + $0x78] sm:$0xff]  ;;  %v495_v63 = vsub.s32 1, %v490_v58  ;;  %v491_v2 = vsub.s32 0, %v490_v58  ;;  %s1087_s29 = sshll.u32 %s435_s11, 4  ;;  %s2110_s29 = int_to_ptr.vmem [resolvable:$true] %s1087_s29 }
  0x86   : > { %1326 = vmatprep.subr.bf16.mxu0 %v1325_v9  ;;  %1360 = vmatprep.subr.bf16.mxu1 %v1325_v9  ;;  %v1331_v20 = vpack.c.bf16 %v465_v17, %v463_v16  ;;  %v1333_v21 = vpack.c.bf16 %v470_v19, %v468_v18  ;;  %v467_v22 = vld [vmem:[#allocation7 + $0x60] sm:$0xff]  ;;  %v469_v23 = vld [vmem:[#allocation7 + $0x70] sm:$0xff]  ;;  %v472_v24 = vld [vmem:[#allocation7 + $0x88] sm:$0xff]  ;;  %s1283_s23 = sshll.u32 %s1785_s17, 9  ;;  %s1103_s25 = sshll.u32 %s2101_s30, 4  ;;  %s2150_s25 = int_to_ptr.vmem [resolvable:$true] %s1103_s25 }
  0x87   : > { %v474_v25 = vld [vmem:[#allocation7 + $0x98] sm:$0xff]  ;;  %v1335_v26 = vpack.c.bf16 %v469_v23, %v467_v22  ;;  %v471_v28 = vld [vmem:[#allocation7 + $0x80] sm:$0xff]  ;;  %v473_v29 = vld [vmem:[#allocation7 + $0x90] sm:$0xff]  ;;  %s2117_s20 = scalar_lea.hbm %s2215_s9, %s1283_s23  ;;  %s1069_s24 = scalar_lea.sflag [#allocation4], %s1951_s13 }
  0x88   : > { %v1337_v27 = vpack.c.bf16 %v474_v25, %v472_v24  ;;  %v476_v30 = vld [vmem:[#allocation7 + $0xa8] sm:$0xff]  ;;  %v478_v31 = vld [vmem:[#allocation7 + $0xb8] sm:$0xff]  ;;  %v1339_v32 = vpack.c.bf16 %v473_v29, %v471_v28  ;;  %v475_v34 = vld [vmem:[#allocation7 + $0xa0] sm:$0xff]  ;;  %s1585_s2 = scalar_lea.vmem %s2110_s29, 512  ;;  %s1705_s28 = smov [#allocation8]  }
  0x89   : > { %1328 = vmatpush1.bf16.msra.mxu0 %v1327_v14  ;;  %1368 = vmatpush1.bf16.msra.mxu1 %v1327_v14  ;;  %v1341_v33 = vpack.c.bf16 %v478_v31, %v476_v30  ;;  %v477_v35 = vld [vmem:[#allocation7 + $0xb0] sm:$0xff]  ;;  %v480_v36 = vld [vmem:[#allocation7 + $0xc8] sm:$0xff]  ;;  %v482_v37 = vld [vmem:[#allocation7 + $0xd8] sm:$0xff]  ;;  %p1586_p3 = scmp.ne.s32.totalorder %s2110_s29, %s1585_s2 }
  0x8a   : > { %1330 = vmatprep.subr.bf16.mxu0 %v1329_v15  ;;  %1361 = vmatprep.subr.bf16.mxu1 %v1329_v15  ;;  %v1343_v38 = vpack.c.bf16 %v477_v35, %v475_v34  ;;  %v1345_v39 = vpack.c.bf16 %v482_v37, %v480_v36  ;;  %v479_v40 = vld [vmem:[#allocation7 + $0xc0] sm:$0xff]  ;;  %v481_v41 = vld [vmem:[#allocation7 + $0xd0] sm:$0xff]  ;;  %v484_v42 = vld [vmem:[#allocation7 + $0xe8] sm:$0xff] }
  0x8b   : > { %v486_v43 = vld [vmem:[#allocation7 + $0xf8] sm:$0xff]  ;;  %v1347_v44 = vpack.c.bf16 %v481_v41, %v479_v40  ;;  %v483_v46 = vld [vmem:[#allocation7 + $0xe0] sm:$0xff]  ;;  %v485_v47 = vld [vmem:[#allocation7 + $0xf0] sm:$0xff]  ;;  %p1587_p7 = pnand %p1586_p3, %p1855_p12 }
  0x8c   : > { %v1349_v45 = vpack.c.bf16 %v486_v43, %v484_v42  ;;  %v1351_v48 = vpack.c.bf16 %v485_v47, %v483_v46  ;;  %v1979_v49 = vld [vmem:[%s1958_s27] sm:$0xff]  ;;  %v1982_v50 = vld [vmem:[%s1966_s21 + $0x10] sm:$0xff]  ;;  %v1988_v51 = vld [vmem:[%s1958_s27 + $0x8] sm:$0xff] }
  0x8d   : > { %1332 = vmatpush1.bf16.msra.mxu0 %v1331_v20  ;;  %1369 = vmatpush1.bf16.msra.mxu1 %v1331_v20  ;;  %v1992_v52 = vld [vmem:[%s1966_s21 + $0x18] sm:$0xff]  ;;  %v1998_v53 = vld [vmem:[%s1958_s27 + $0x10] sm:$0xff]  ;;  %v2007_v55 = vld [vmem:[%s1966_s21] sm:$0xff]  ;;  %p1588_p9 = pneg %p1587_p7 }
  0x8e   : > { %1334 = vmatprep.subr.bf16.mxu0 %v1333_v21  ;;  %1362 = vmatprep.subr.bf16.mxu1 %v1333_v21  ;;  %v2003_v54 = vld [vmem:[%s1958_s27 + $0x18] sm:$0xff]  ;;  %v2012_v56 = vld [vmem:[%s1966_s21 + $0x8] sm:$0xff]  ;;  %v487_v1 = vld [vmem:[%s2209_s3] sm:$0x3]  ;;  %s1589_s27 = sshll.u32 %s1705_s28, 4  ;;  %s1590_s27 = int_to_ptr.vmem [resolvable:$false] %s1589_s27 }
  0x8f   : > { %v496_v7 = vrot.slane %v487_v1, %v495_v63  ;;  %v492_v8 = vrot.slane %v487_v1, %v491_v2  ;;  %s1591_s0 = scalar_lea.vmem %s1590_s27, 1024  ;;  %p1592_p1 = scmp.lt.s32.totalorder %s2110_s29, %s1590_s27 }
  0x90   : > { %p1593_p5 = scmp.lt.s32.totalorder %s1591_s0, %s1585_s2 }
  0x91   : > { %1336 = vmatpush1.bf16.msra.mxu0 %v1335_v26  ;;  %1370 = vmatpush1.bf16.msra.mxu1 %v1335_v26 }
  0x92   : > { %1338 = vmatprep.subr.bf16.mxu0 %v1337_v27  ;;  %1363 = vmatprep.subr.bf16.mxu1 %v1337_v27  ;;  %p1594_p2 = por %p1593_p5, %p1592_p1 }
  0x94   : > { %p1595_p6 = pnand %p1594_p2, %p1588_p9 }
  0x95   : > { %1340 = vmatpush1.bf16.msra.mxu0 %v1339_v32  ;;  %1371 = vmatpush1.bf16.msra.mxu1 %v1339_v32 }
  0x96   : > { %1342 = vmatprep.subr.bf16.mxu0 %v1341_v33  ;;  %1364 = vmatprep.subr.bf16.mxu1 %v1341_v33 }
  0x99   : > { %1344 = vmatpush1.bf16.msra.mxu0 %v1343_v38  ;;  %1372 = vmatpush1.bf16.msra.mxu1 %v1343_v38 }
  0x9a   : > { %1346 = vmatprep.subr.bf16.mxu0 %v1345_v39  ;;  %1365 = vmatprep.subr.bf16.mxu1 %v1345_v39 }
  0x9d   : > { %1348 = vmatpush1.bf16.msra.mxu0 %v1347_v44  ;;  %1373 = vmatpush1.bf16.msra.mxu1 %v1347_v44 }
  0x9e   : > { %1350 = vmatprep.subr.bf16.mxu0 %v1349_v45  ;;  %1366 = vmatprep.subr.bf16.mxu1 %v1349_v45 }
  0xa1   : > { %1352 = vmatpush1.bf16.msra.mxu0 %v1351_v48  ;;  %1374 = vmatpush1.bf16.msra.mxu1 %v1351_v48 }
  0xa4   : > { %564 = vmatmul.mubr.f32.vlgmr.msra.gmra.mrb[0].mxu0 %v1979_v49  ;;  %600 = vmatmul.mubr.f32.vlgmr.msra.gmra.mrb[0].mxu1 %v1982_v50 }
  0xa5   : > { %569 = vmatprep.mubr.f32.mxu0 %v1700_v0  ;;  %605 = vmatprep.mubr.f32.mxu1 %v1700_v0 }
  0xa8   : > { %570 = vmatmul.mubr.f32.gmra.mrb[2].mxu0 %v1988_v51  ;;  %606 = vmatmul.mubr.f32.gmra.mrb[2].mxu1 %v1992_v52 }
  0xa9   : > { %575 = vmatprep.mubr.f32.mxu0 %v1700_v0  ;;  %1305 = vmatprep.mubr.msk.f32.mxu1 %vm1702_vm0, %v1700_v0 }
  0xac   : > { %576 = vmatmul.mubr.f32.gmra.mrb[4].mxu0 %v1998_v53 }
  0xad   : > { %581 = vmatprep.mubr.f32.mxu0 %v1700_v0 }
  0xb0   : > { %582 = vmatmul.mubr.f32.gmra.mrb[6].mxu0 %v2003_v54 }
  0xb1   : > { %587 = vmatprep.mubr.f32.mxu0 %v1700_v0 }
  0xb4   : > { %588 = vmatmul.mubr.f32.gmra.mrb[8].mxu0 %v2007_v55 }
  0xb5   : > { %593 = vmatprep.mubr.f32.mxu0 %v1700_v0 }
  0xb8   : > { %594 = vmatmul.mubr.f32.gmra.mrb[10].mxu0 %v2012_v56 }
 0x177   : > { %v565_v59 = vpop.f32.mrb[0].mxu0  ;;  %v601_v60 = vpop.f32.mrb[0].mxu1 }
 0x178   : > { %v567_v61 = vpop.f32.mrb[1].mxu0  ;;  %v603_v62 = vpop.f32.mrb[1].mxu1  ;;  %v602_v12 = vadd.f32 %v601_v60, %v492_v8  ;;  %v566_v31 = vadd.f32 %v565_v59, %v492_v8 }
 0x179   : > { %v604_v10 = vadd.f32 %v603_v62, %v496_v7  ;;  %v568_v27 = vadd.f32 %v567_v61, %v496_v7 }
 0x17b   : > { %v571_v3 = vpop.f32.mrb[2].mxu0  ;;  %v607_v4 = vpop.f32.mrb[2].mxu1 }
 0x17c   : > { %v573_v5 = vpop.f32.mrb[3].mxu0  ;;  %v609_v6 = vpop.f32.mrb[3].mxu1  ;;  %v608_v19 = vadd.f32 %v607_v4, %v492_v8  ;;  %v572_v40 = vadd.f32 %v571_v3, %v492_v8 }
 0x17d   : > { %v610_v16 = vadd.f32 %v609_v6, %v496_v7  ;;  %v574_v36 = vadd.f32 %v573_v5, %v496_v7 }
 0x17f   : > { %v577_v9 = vpop.f32.mrb[4].mxu0 }
 0x180   : > { %v579_v11 = vpop.f32.mrb[5].mxu0  ;;  %v578_v14 = vadd.f32 %v577_v9, %v492_v8 }
 0x181   : > { %v580_v13 = vadd.f32 %v579_v11, %v496_v7 }
 0x183   : > { %v583_v15 = vpop.f32.mrb[6].mxu0  ;;  %v614_v17 = vsub.f32 %v580_v13, %v604_v10 }
 0x184   : > { %v585_v18 = vpop.f32.mrb[7].mxu0  ;;  %v584_v23 = vadd.f32 %v583_v15, %v492_v8 }
 0x185   : > { %v586_v20 = vadd.f32 %v585_v18, %v496_v7  ;;  %v618_v21 = vmul.f32 %v614_v17, %v578_v14  ;;  %v658_v22 = vmul.f32 %v614_v17, %v602_v12 }
 0x187   : > { %v589_v24 = vpop.f32.mrb[8].mxu0  ;;  %624 = vadd.xlane.f32.xlu0 %v618_v21  ;;  %v615_v25 = vsub.f32 %v586_v20, %v610_v16  ;;  %v698_v21 = vsub.f32 %v1998_v53, %v1982_v50 }
 0x188   : > { %v591_v26 = vpop.f32.mrb[9].mxu0  ;;  %v590_v32 = vadd.f32 %v589_v24, %v492_v8 }
 0x189   : > { %v592_v28 = vadd.f32 %v591_v26, %v496_v7  ;;  %v619_v29 = vmul.f32 %v615_v25, %v584_v23  ;;  %v659_v30 = vmul.f32 %v615_v25, %v608_v19 }
 0x18b   : > { %v612_v33 = vsub.f32 %v568_v27, %v592_v28  ;;  %v595_v34 = vpop.f32.mrb[10].mxu0  ;;  %626 = vadd.xlane.f32.xlu1 %v619_v29  ;;  %v699_v27 = vsub.f32 %v2003_v54, %v1992_v52 }
 0x18c   : > { %v597_v35 = vpop.f32.mrb[11].mxu0  ;;  %v596_v41 = vadd.f32 %v595_v34, %v492_v8 }
 0x18d   : > { %v598_v37 = vadd.f32 %v597_v35, %v496_v7  ;;  %v656_v38 = vmul.f32 %v612_v33, %v590_v32  ;;  %v616_v39 = vmul.f32 %v612_v33, %v566_v31  ;;  %v696_v35 = vsub.f32 %v1979_v49, %v2007_v55 }
 0x18f   : > { %v613_v42 = vsub.f32 %v574_v36, %v598_v37  ;;  %660 = vadd.xlane.f32.xlu1 %v656_v38  ;;  %620 = vadd.xlane.f32.xlu0 %v616_v39 }
 0x191   : > { %v657_v43 = vmul.f32 %v613_v42, %v596_v41  ;;  %v617_v44 = vmul.f32 %v613_v42, %v572_v40  ;;  %v697_v40 = vsub.f32 %v1988_v51, %v2012_v56 }
 0x193   : > { %662 = vadd.xlane.f32.xlu1 %v657_v43  ;;  %622 = vadd.xlane.f32.xlu0 %v617_v44 }
 0x197   : > { %666 = vadd.xlane.f32.xlu1 %v659_v30  ;;  %664 = vadd.xlane.f32.xlu0 %v658_v22 }
 0x214   : > { %v625_v45 = vpop.xlane.xlu0 %624 }
 0x215   : > { %v1258_v46 = vmul.f32 -0.088388346, %v625_v45 }
 0x217   : > { %v640_v47 = vmul.f32 1.442695, %v1258_v46 }
 0x218   : > { %v627_v48 = vpop.xlane.xlu1 %626 }
 0x219   : > { %1461 = vpow2.f32 %v640_v47  ;;  %v1259_v57 = vmul.f32 -0.088388346, %v627_v48 }
 0x21b   : > { %v642_v58 = vmul.f32 1.442695, %v1259_v57 }
 0x21c   : > { %v661_v59 = vpop.xlane.xlu1 %660  ;;  %v621_v60 = vpop.xlane.xlu0 %620 }
 0x21d   : > { %1463 = vpow2.f32 %v642_v58  ;;  %v1260_v61 = vmul.f32 -0.088388346, %v661_v59  ;;  %v1256_v62 = vmul.f32 -0.088388346, %v621_v60 }
 0x21f   : > { %v676_v63 = vmul.f32 1.442695, %v1260_v61  ;;  %v636_v1 = vmul.f32 1.442695, %v1256_v62  ;;  %v1701_v61 = vmov 0.0|0.0  }
 0x220   : > { %v663_v2 = vpop.xlane.xlu1 %662  ;;  %v623_v3 = vpop.xlane.xlu0 %622  ;;  %1353 = vmatprep.subr.bf16.mxu1 %v1701_v61 }
 0x221   : > { %1465 = vpow2.f32 %v676_v63  ;;  %v1261_v4 = vmul.f32 -0.088388346, %v663_v2  ;;  %v1257_v5 = vmul.f32 -0.088388346, %v623_v3 }
 0x222   : > { %1467 = vpow2.f32 %v636_v1 }
 0x223   : > { %v1462_v6 = vpop.eup %1461  ;;  %v678_v7 = vmul.f32 1.442695, %v1261_v4  ;;  %v638_v8 = vmul.f32 1.442695, %v1257_v5 }
 0x224   : > { %v646_v9 = vadd.f32 1.0, %v1462_v6  ;;  %v667_v10 = vpop.xlane.xlu1 %666  ;;  %v665_v11 = vpop.xlane.xlu0 %664 }
 0x225   : > { %1469 = vpow2.f32 %v678_v7  ;;  %v1263_v12 = vmul.f32 -0.088388346, %v667_v10  ;;  %v1262_v13 = vmul.f32 -0.088388346, %v665_v11 }
 0x226   : > { %1471 = vrcp.f32 %v646_v9 }
 0x227   : > { %v1464_v14 = vpop.eup %1463  ;;  %1473 = vpow2.f32 %v638_v8  ;;  %v682_v15 = vmul.f32 1.442695, %v1263_v12  ;;  %v680_v16 = vmul.f32 1.442695, %v1262_v13  ;;  %v737_v12 = vld [vmem:[%s2210_s4] sm:$0x3] }
 0x228   : > { %v647_v17 = vadd.f32 1.0, %v1464_v14  ;;  %v820_v13 = vld [vmem:[%s2213_s7] sm:$0xf] }
 0x229   : > { %1475 = vpow2.f32 %v682_v15 }
 0x22a   : > { %1477 = vrcp.f32 %v647_v17 }
 0x22b   : > { %v1466_v18 = vpop.eup %1465  ;;  %1479 = vpow2.f32 %v680_v16 }
 0x22c   : > { %v1468_v19 = vpop.eup %1467  ;;  %v684_v20 = vadd.f32 1.0, %v1466_v18 }
 0x22d   : > { %v644_v22 = vadd.f32 1.0, %v1468_v19  ;;  %v819_v19 = vld [vmem:[%s2212_s6] sm:$0xf] }
 0x22e   : > { %1481 = vrcp.f32 %v684_v20 }
 0x22f   : > { %v1470_v23 = vpop.eup %1469  ;;  %1483 = vrcp.f32 %v644_v22 }
 0x230   : > { %v1472_v24 = vpop.eup %1471  ;;  %v685_v25 = vadd.f32 1.0, %v1470_v23 }
 0x231   : > { %v1474_v26 = vpop.eup %1473  ;;  %v702_v28 = vmul.f32 %v1472_v24, %v698_v21 }
 0x232   : > { %v645_v29 = vadd.f32 1.0, %v1474_v26  ;;  %1485 = vrcp.f32 %v685_v25 }
 0x233   : > { %v1476_v30 = vpop.eup %1475  ;;  %v2024_v31 = vadd.f32 %v702_v28, %v1982_v50  ;;  %v911_v28 = vld [vmem:[%s2214_s8 + $0x8] sm:$0xff] }
 0x234   : > { %v1478_v32 = vpop.eup %1477  ;;  %1487 = vrcp.f32 %v645_v29  ;;  %v687_v53 = vadd.f32 1.0, %v1476_v30  ;;  %v912_v29 = vld [vmem:[%s2214_s8 + $0x10] sm:$0xff]  ;;  %v913_v30 = vld [vmem:[%s2214_s8 + $0x18] sm:$0xff] }
 0x235   : > { %v1480_v33 = vpop.eup %1479  ;;  %720 = vadd.xlane.f32.xlu0 %v2024_v31  ;;  %v703_v34 = vmul.f32 %v1478_v32, %v699_v27  ;;  %v1704_v32 = vmov 1  }
 0x236   : > { %v686_v36 = vadd.f32 1.0, %v1480_v33  ;;  %1489 = vrcp.f32 %v687_v53 }
 0x237   : > { %v2030_v54 = vadd.f32 %v703_v34, %v1992_v52 }
 0x238   : > { %v1482_v37 = vpop.eup %1481  ;;  %1491 = vrcp.f32 %v686_v36 }
 0x239   : > { %v1484_v38 = vpop.eup %1483  ;;  %722 = vadd.xlane.f32.xlu1 %v2030_v54  ;;  %v708_v42 = vmul.f32 %v1482_v37, %v696_v35 }
 0x23a   : > { %v700_v39 = vmul.f32 %v1484_v38, %v696_v35 }
 0x23b   : > { %v2040_v45 = vadd.f32 %v708_v42, %v2007_v55 }
 0x23c   : > { %v2036_v41 = vadd.f32 %v700_v39, %v2007_v55  ;;  %v1486_v43 = vpop.eup %1485 }
 0x23d   : > { %v709_v48 = vmul.f32 %v1486_v43, %v697_v40 }
 0x23e   : > { %v1488_v49 = vpop.eup %1487  ;;  %716 = vadd.xlane.f32.xlu0 %v2036_v41 }
 0x23f   : > { %v701_v44 = vmul.f32 %v1488_v49, %v697_v40  ;;  %v2048_v58 = vadd.f32 %v709_v48, %v2012_v56 }
 0x240   : > { %v1490_v46 = vpop.eup %1489 }
 0x241   : > { %v2043_v47 = vadd.f32 %v701_v44, %v2012_v56  ;;  %v711_v60 = vmul.f32 %v1490_v46, %v699_v27  ;;  %v1703_v56 = vmov 0  }
 0x242   : > { %v1492_v57 = vpop.eup %1491  ;;  %724 = vadd.xlane.f32.xlu0 %v2040_v45  ;;  %1454 = vset.pattern.permute.xlu1 %v1703_v56 }
 0x243   : > { %718 = vadd.xlane.f32.xlu1 %v2043_v47  ;;  %v710_v51 = vmul.f32 %v1492_v57, %v698_v21  ;;  %v2056_v55 = vadd.f32 %v711_v60, %v1992_v52  ;;  %1453 = vset.pattern.permute.xlu0 %v1703_v56 }
 0x245   : > { %v2051_v59 = vadd.f32 %v710_v51, %v1982_v50  ;;  %v738_v50 = vld [vmem:[%s2211_s5] sm:$0x3] }
 0x247   : > { %726 = vadd.xlane.f32.xlu1 %v2048_v58  ;;  %728 = vadd.xlane.f32.xlu0 %v2051_v59 }
 0x24b   : > { %730 = vadd.xlane.f32.xlu1 %v2056_v55 }
 0x25c   : > { %823 = vperm.xlu1 %1454, %v820_v13  }
 0x25d   : > { %741 = vperm.xlu0 %1453, %v738_v50  }
 0x261   : > { %1460 = vset.pattern.permute.xlu0 %v1704_v32 }
 0x2c2   : > { %v721_v52 = vpop.xlane.xlu0 %720 }
 0x2c6   : > { %v723_v63 = vpop.xlane.xlu1 %722 }
 0x2cb   : > { %v717_v62 = vpop.xlane.xlu0 %716 }
 0x2cf   : > { %v725_v2 = vpop.xlane.xlu0 %724 }
 0x2d0   : > { %v719_v1 = vpop.xlane.xlu1 %718  ;;  %v733_v4 = vsel %vm732_vm1, %v717_v62, %v725_v2 }
 0x2d4   : > { %v727_v3 = vpop.xlane.xlu1 %726  ;;  %v729_v7 = vpop.xlane.xlu0 %728 }
 0x2d5   : > { %v734_v5 = vsel %vm732_vm1, %v719_v1, %v727_v3  ;;  %v735_v9 = vsel %vm732_vm1, %v721_v52, %v729_v7 }
 0x2d6   : > { %v1354_v6 = vpack.c.bf16 %v734_v5, %v733_v4 }
 0x2d8   : > { %v731_v8 = vpop.xlane.xlu1 %730  ;;  %1355 = vmatpush3.bf16.msra.mxu1 %v1354_v6 }
 0x2d9   : > { %v736_v10 = vsel %vm732_vm1, %v723_v63, %v731_v8  ;;  %1356 = vmatprep.subr.bf16.mxu1 %v1701_v61 }
 0x2da   : > { %v1357_v11 = vpack.c.bf16 %v736_v10, %v735_v9 }
 0x2dc   : > { %1358 = vmatpush3.bf16.msra.mxu1 %v1357_v11  ;;  %v742_v14 = vpop.permute.xlu0 %741  ;;  %v824_v20 = vpop.permute.xlu1 %823 }
 0x2dd   : > { %1308 = vmatprep.subr.mxu1 %v1700_v0 }
 0x2df   : > { %1306 = vmatmul.mubr.msk.f32.vlgmr.msra.gmra.mrb[4].mxu1 %vm744_vm2, %v737_v12 }
 0x2e0   : > { %1310 = vmatprep.mubr.msk.f32.mxu1 %vm1702_vm0, %v1700_v0  ;;  %v910_v0 = vld [vmem:[%s2214_s8] sm:$0xff] }
 0x3b2   : > { %v814_v15 = vpop.f32.mrb[4].mxu1 }
 0x3b3   : > { %v815_v16 = vadd.f32 %v814_v15, %v742_v14  ;;  %v1307_v17 = vpop.f32.mrb[5].mxu1 }
 0x3b5   : > { %v818_v18 = vmax.f32 %v815_v16, 0.0 }
 0x3b7   : > { %1309 = vmatpush3.msk.msra.mxu1 %vm830_vm3, %v818_v18 }
 0x3b8   : > { %1311 = vmatmul.mubr.msk.f32.vlgmr.msra.gmra.mrb[6].mxu1 %vm826_vm4, %v819_v19 }
 0x3b9   : > { %1315 = vmatprep.mubr.msk.f32.mxu1 %vm914_vm5, %v910_v0 }
 0x48b   : > { %v900_v21 = vpop.f32.mrb[6].mxu1 }
 0x48c   : > { %v901_v22 = vadd.f32 %v900_v21, %v824_v20  ;;  %v1312_v23 = vpop.f32.mrb[7].mxu1 }
 0x48e   : > { %v1267_v24 = vmul.f32 -1.442695, %v901_v22 }
 0x490   : > { %1493 = vpow2.f32 %v1267_v24 }
 0x49a   : > { %v1494_v25 = vpop.eup %1493 }
 0x49b   : > { %v907_v26 = vadd.f32 1.0, %v1494_v25 }
 0x49d   : > { %1495 = vrcp.f32 %v907_v26 }
 0x4a7   : > { %v1496_v27 = vpop.eup %1495 }
 0x4a8   : > { %1313 = vmatprep.subr.msk.mxu1 %vm927_vm6, %v1496_v27 }
 0x4a9   : > { %1314 = vmatpush3.msk.msra.mxu1 %vm927_vm6, %v1496_v27 }
 0x4aa   : > { %1316 = vmatmul.mubr.msk.f32.vlgmr.msra.gmra.mrb[8].mxu1 %vm914_vm5, %v911_v28 }
 0x4ab   : > { %1318 = vmatprep.mubr.msk.f32.mxu1 %vm914_vm5, %v912_v29 }
 0x4ae   : > { %1319 = vmatmul.mubr.msk.f32.gmra.mrb[10].mxu1 %vm914_vm5, %v913_v30 }
 0x57d   : > { %v1317_v53 = vpop.f32.mrb[8].mxu1 }
 0x57e   : > { %1023 = vperm.xlu1 %1454, %v1317_v53   ;;  %v997_v33 = vpop.f32.mrb[9].mxu1 }
 0x581   : > { %v1320_v34 = vpop.f32.mrb[10].mxu1 }
 0x582   : > { %1455 = vset.pattern.permute.xlu1 %v1704_v32  ;;  %1053 = vperm.xlu0 %1460, %v1320_v34   ;;  %v1007_v35 = vpop.f32.mrb[11].mxu1 }
 0x583   : > { %1045 = vperm.xlu1 %1455, %v1317_v53  }
 0x587   : > { %1456 = vset.pattern.permute.xlu1 %v1703_v56 }
 0x588   : > { %1018 = vperm.xlu1 %1456, %v997_v33  }
 0x58c   : > { %1457 = vset.pattern.permute.xlu1 %v1704_v32 }
 0x58d   : > { %1041 = vperm.xlu1 %1457, %v997_v33  }
 0x591   : > { %1458 = vset.pattern.permute.xlu1 %v1703_v56 }
 0x592   : > { %1033 = vperm.xlu1 %1458, %v1320_v34  }
 0x596   : > { %1028 = vperm.xlu1 %1458, %v1007_v35  }
 0x59a   : > { %1459 = vset.pattern.permute.xlu1 %v1704_v32 }
 0x59b   : > { %1049 = vperm.xlu1 %1459, %v1007_v35  }
 0x5fd   : > { %v1024_v36 = vpop.permute.xlu1 %1023 }
 0x5fe   : > { %v1037_v37 = vmul.f32 %v1024_v36, %v2043_v47 }
 0x600   : > { %1061 = vst [vmem:[%s435_s11 + $0x8] sm:$0xff] %v1037_v37 }
 0x601   : > { %v1054_v38 = vpop.permute.xlu0 %1053 }
 0x602   : > { %v1059_v39 = vmul.f32 %v1054_v38, %v2056_v55  ;;  %v1046_v40 = vpop.permute.xlu1 %1045 }
 0x603   : > { %v1057_v42 = vmul.f32 %v1046_v40, %v2048_v58 }
 0x604   : > { %1067 = vst [vmem:[%s2101_s30 + $0x18] sm:$0xff] %v1059_v39 }
 0x605   : > { %1065 = vst [vmem:[%s2101_s30 + $0x8] sm:$0xff] %v1057_v42 }
 0x607   : > { %v1019_v43 = vpop.permute.xlu1 %1018 }
 0x608   : > { %v1036_v49 = vmul.f32 %v1019_v43, %v2036_v41 }
 0x60a   : > { %1060 = vst [vmem:[%s435_s11] sm:$0xff] %v1036_v49 }
 0x60c   : > { %v1042_v44 = vpop.permute.xlu1 %1041 }
 0x60d   : > { %v1056_v46 = vmul.f32 %v1042_v44, %v2040_v45 }
 0x60f   : > { %1064 = vst [vmem:[%s2101_s30] sm:$0xff] %v1056_v46 }
 0x611   : > { %v1034_v47 = vpop.permute.xlu1 %1033 }
 0x612   : > { %v1039_v48 = vmul.f32 %v1034_v47, %v2030_v54 }
 0x614   : > { %1063 = vst [vmem:[%s435_s11 + $0x18] sm:$0xff] %v1039_v48 }
 0x615   : > { %v1029_v57 = vpop.permute.xlu1 %1028 }
 0x616   : > { %v1038_v41 = vmul.f32 %v1029_v57, %v2024_v31 }
 0x618   : > { %1062 = vst [vmem:[%s435_s11 + $0x10] sm:$0xff] %v1038_v41 }
 0x619   : > { %1598 = shalt.err (!%p1595_p6)
}
 0x61a   : > { %s1599_s15 = scalar_lea.hbm %s2117_s20, 512  ;;  %s1603_s22 = scalar_lea.hbm %s2215_s9, 1024 }
 0x61b   : > { %p1600_p8 = scmp.ne.s32.totalorder %s2117_s20, %s1599_s15  ;;  %p1604_p4 = scmp.lt.u32.totalorder %s2117_s20, %s2215_s9 }
 0x61c   : > { %p1605_p11 = scmp.lt.u32.totalorder %s1603_s22, %s1599_s15  ;;  %p1607_p3 = scmp.lt.u32.totalorder %s1599_s15, %s2117_s20 }
 0x61d   : > { %p1601_p10 = pnand %p1600_p8, %p1855_p12 }
 0x61e   : > { %p1606_p13 = por %p1605_p11, %p1604_p4 }
 0x61f   : > { %p1602_p0 = pneg %p1601_p10 }
 0x620   : > { %p1608_p7 = por %p1607_p3, %p1606_p13 }
 0x622   : > { %p1609_p9 = pnand %p1608_p7, %p1602_p0 }
 0x624   : > { %1612 = shalt.err (!%p1609_p9)
}
 0x625   : > { %s1706_s18 = smov 128   ;;  %s1707_s2 = smov 8   ;;  %v1050_v31 = vpop.permute.xlu1 %1049 }
 0x626   : > { %1383 = dma.vmem_to_hbm [thread:$0]  (%p1855_p12), %s2110_s29, 512, %s2117_s20, %s1069_s24, %s1706_s18, %s1706_s18, %s1707_s2   ;;  %v1058_v54 = vmul.f32 %v1050_v31, %v2051_v59 }
 0x627   : > { %s2158_s0 = scalar_lea.hbm %s2216_s10, %s1283_s23  ;;  %s1074_s15 = scalar_lea.sflag [#allocation10], %s1951_s13 }
 0x628   : > { %1066 = vst [vmem:[%s2101_s30 + $0x10] sm:$0xff] %v1058_v54  ;;  %s1613_s21 = scalar_lea.vmem %s2150_s25, 512  ;;  %s1708_s29 = smov [#allocation9]  }
 0x629   : > { %p1614_p1 = scmp.ne.s32.totalorder %s2150_s25, %s1613_s21  ;;  %s1617_s20 = sshll.u32 %s1708_s29, 4  ;;  %s1618_s20 = int_to_ptr.vmem [resolvable:$false] %s1617_s20 }
 0x62a   : > { %s1619_s24 = scalar_lea.vmem %s1618_s20, 1024  ;;  %p1620_p6 = scmp.lt.s32.totalorder %s2150_s25, %s1618_s20 }
 0x62b   : > { %p1615_p5 = pnand %p1614_p1, %p1855_p12  ;;  %p1621_p8 = scmp.lt.s32.totalorder %s1619_s24, %s1613_s21 }
 0x62d   : > { %p1616_p2 = pneg %p1615_p5  ;;  %p1622_p10 = por %p1621_p8, %p1620_p6 }
 0x62f   : > { %p1623_p0 = pnand %p1622_p10, %p1616_p2 }
 0x631   : > { %1626 = shalt.err (!%p1623_p0)
}
 0x632   : > { %s1627_s17 = scalar_lea.hbm %s2158_s0, 512  ;;  %s1631_s19 = scalar_lea.hbm %s2216_s10, 1024 }
 0x633   : > { %p1628_p4 = scmp.ne.s32.totalorder %s2158_s0, %s1627_s17  ;;  %p1632_p3 = scmp.lt.u32.totalorder %s2158_s0, %s2216_s10 }
 0x634   : > { %p1633_p7 = scmp.lt.u32.totalorder %s1631_s19, %s1627_s17  ;;  %p1635_p1 = scmp.lt.u32.totalorder %s1627_s17, %s2158_s0 }
 0x635   : > { %p1629_p11 = pnand %p1628_p4, %p1855_p12 }
 0x636   : > { %p1634_p9 = por %p1633_p7, %p1632_p3 }
 0x637   : > { %p1630_p13 = pneg %p1629_p11 }
 0x638   : > { %p1636_p5 = por %p1635_p1, %p1634_p9 }
 0x63a   : > { %p1637_p2 = pnand %p1636_p5, %p1630_p13 }
 0x63c   : > { %1640 = shalt.err (!%p1637_p2)
}
 0x63d   : > { %1384 = dma.vmem_to_hbm [thread:$0]  (%p1855_p12), %s2150_s25, 512, %s2158_s0, %s1074_s15, %s1706_s18, %s1706_s18, %s1707_s2  }
 0x63e PF: > { %s2247_s26 = sld [smem:[#allocation16_spill]]  ;;  %s2248_s28 = sld [smem:[#allocation18_spill]] }
 0x63f   : > { %p2250_p8 = scmp.ge.s32.totalorder %s1691_s16, 2 }
 0x644   : > { %s1118_s27 = sand.u32 1, %s2247_s26   ;;  %p2249_p6 = scmp.ne.s32.totalorder %s2248_s28, 0 }
 0x645   : > { %s1119_s21 = scalar_lea.sflag [#allocation4], %s1118_s27 }
 0x646   : > { %p1399_p10 = pnand %p2250_p8, %p2249_p6 }
 0x648   : > { %1670 = dma.done.wait (!%p1399_p10), %s1119_s21, 512  }
 0x649   : > { %1672 = vsyncadd (!%p1399_p10), %s1119_s21, 4294966784  ;;  %s1128_s12 = scalar_lea.sflag [#allocation10], %s1118_s27 }
 0x64a   : > { %1674 = dma.done.wait (!%p1399_p10), %s1128_s12, 512  }
 0x64b   : > { %1676 = vsyncadd (!%p1399_p10), %s1128_s12, 4294966784  ;;  %s2251_s16 = sld [smem:[#allocation19_spill]]  ;;  %s2252_s29 = sld [smem:[#allocation17_spill]] }
 0x64c   : > { %s2253_s15 = sld [smem:[#allocation20_spill]]  ;;  %s2254_s13 = smov %s1683_s14 }
 0x651   : > { %p30_p12 = scmp.ge.s32.totalorder %s2251_s16, 4   ;;  %s2255_s14 = smov %s2252_s29 }
 0x653   :  { %32 = sbr.rel (!%p30_p12) target bundleno = 12 (0xc), region = 135 }
 0x65a   :  { %1133 = vsyncpa [#allocation3], 1 }
 0x65b   :  { %1135 = vsyncpa [#allocation3 + $0x1], 1 }
 0x65c   :  { %1136 = vsyncpa [#allocation6], 1 }
 0x65d   :  { %1138 = vsyncpa [#allocation6 + $0x1], 1 }
 0x65e   :  { %1139 = vsyncpa [#allocation4], 1 }
 0x65f   :  { %1141 = vsyncpa [#allocation4 + $0x1], 1 }
 0x660   :  { %1142 = vsyncpa [#allocation10], 1 }
 0x661   :  { %1144 = vsyncpa [#allocation10 + $0x1], 1 }

</bundles_post_ra>
